<compile_context>
chip_gen: v7x
topology: tpu7x:2x2x1
jax: 0.10.0
libtpu: 0.0.40
codegen_flags: <defaults>
</compile_context>

<pallas_src>
import jax
import jax.numpy as jnp
from jax.experimental import pallas as pl
from jax.experimental.pallas import tpu as pltpu


def _luminance_l1_kernel(pred_ref, target_ref, rgb_out_ref, lum_out_ref,
                         acc_rgb, acc_lum):
    """Grid: (batch, spatial_tile).  Blocks are (1, C, TILE)."""
    j = pl.program_id(1)

    @pl.when(j == 0)
    def _init():
        acc_rgb[...] = jnp.zeros_like(acc_rgb)
        acc_lum[...] = jnp.zeros_like(acc_lum)

    p = pred_ref[...].astype(jnp.float32)    # (1, C, T)
    t = target_ref[...].astype(jnp.float32)  # (1, C, T)

    # Compute the difference once; reuse it for both loss terms.
    d = p - t                                # (1, C, T)

    # RGB term: pure elementwise accumulate (no per-step reduction).
    acc_rgb[...] += jnp.abs(d)

    # Luminance term (ITU-R BT.601 weights on channels 0..2).
    lum_d = (0.2989 * d[:, 0:1, :]
             + 0.587 * d[:, 1:2, :]
             + 0.114 * d[:, 2:3, :])          # (1, 1, T)
    acc_lum[...] += jnp.abs(lum_d)

    @pl.when(j == pl.num_programs(1) - 1)
    def _finalize():
        # One cross-lane reduction per batch element, done once at the end.
        rgb_s = jnp.sum(acc_rgb[...])
        lum_s = jnp.sum(acc_lum[...])
        rgb_out_ref[...] = jnp.full(rgb_out_ref.shape, rgb_s, jnp.float32)
        lum_out_ref[...] = jnp.full(lum_out_ref.shape, lum_s, jnp.float32)


def luminance_l1_loss(pred, target, luminance_weight=0.5, loss_weight=1.0,
                      reduction="mean", block_bytes=2 * 1024 * 1024):
    """Pallas TPU LuminanceL1Loss forward. pred/target: (N, C, H, W)."""
    assert reduction == "mean", "only 'mean' reduction implemented"
    # TODO(synk): 'sum'/'none' reductions not implemented (module default is 'mean').
    assert pred.shape == target.shape
    N, C, H, W = pred.shape
    assert C >= 3, "luminance term requires at least 3 channels"
    S = H * W

    # Lane-dense flatten: (N, C, H, W) -> (N, C, H*W).
    p = pred.reshape(N, C, S)
    t = target.reshape(N, C, S)

    # Pick a lane tile (multiple of 128) so each input block is ~block_bytes,
    # minimizing zero-padding when several tiles are needed.
    bytes_per_lane = C * 4  # float32 compute
    max_tile = max(128, (block_bytes // bytes_per_lane) // 128 * 128)
    n_tiles = pl.cdiv(S, max_tile)
    tile = pl.cdiv(pl.cdiv(S, n_tiles), 128) * 128
    s_pad = n_tiles * tile
    if s_pad != S:
        pad = s_pad - S
        # Zero-pad both inputs identically -> padded |diff| contributes nothing.
        p = jnp.pad(p, ((0, 0), (0, 0), (0, pad)))
        t = jnp.pad(t, ((0, 0), (0, 0), (0, pad)))

    rgb_part, lum_part = pl.pallas_call(
        _luminance_l1_kernel,
        out_shape=(
            jax.ShapeDtypeStruct((N, 1, 128), jnp.float32),  # per-batch RGB |diff| sum
            jax.ShapeDtypeStruct((N, 1, 128), jnp.float32),  # per-batch luminance |diff| sum
        ),
        grid_spec=pltpu.PrefetchScalarGridSpec(
            num_scalar_prefetch=0,
            grid=(N, n_tiles),
            in_specs=[
                pl.BlockSpec((1, C, tile), lambda b, j: (b, 0, j)),
                pl.BlockSpec((1, C, tile), lambda b, j: (b, 0, j)),
            ],
            out_specs=[
                pl.BlockSpec((1, 1, 128), lambda b, j: (b, 0, 0)),
                pl.BlockSpec((1, 1, 128), lambda b, j: (b, 0, 0)),
            ],
            scratch_shapes=[
                pltpu.VMEM((1, C, tile), jnp.float32),  # rgb accumulator
                pltpu.VMEM((1, 1, tile), jnp.float32),  # luminance accumulator
            ],
        ),
        compiler_params=pltpu.CompilerParams(
            # batch parallel (2 TCs on v7x), spatial axis carries the accumulator
            dimension_semantics=("parallel", "arbitrary"),
            vmem_limit_bytes=48 * 1024 * 1024,
        ),
    )(p, t)

    rgb_total = jnp.sum(rgb_part[:, 0, 0])
    lum_total = jnp.sum(lum_part[:, 0, 0])
    rgb_loss = rgb_total / float(N * C * H * W)   # mean over (N, C, H, W)
    lum_loss = lum_total / float(N * H * W)       # mean over (N, H, W)
    return loss_weight * (luminance_weight * lum_loss
                          + (1.0 - luminance_weight) * rgb_loss)


def _reference(pred, target, luminance_weight=0.5, loss_weight=1.0):
    p = pred.astype(jnp.float32)
    t = target.astype(jnp.float32)
    lum_p = 0.2989 * p[:, 0] + 0.587 * p[:, 1] + 0.114 * p[:, 2]
    lum_t = 0.2989 * t[:, 0] + 0.587 * t[:, 1] + 0.114 * t[:, 2]
    lum_loss = jnp.mean(jnp.abs(lum_p - lum_t))
    rgb_loss = jnp.mean(jnp.abs(p - t))
    return loss_weight * (luminance_weight * lum_loss
                          + (1 - luminance_weight) * rgb_loss)


if __name__ == "__main__":
    key = jax.random.PRNGKey(0)
    k1, k2, k3, k4 = jax.random.split(key, 4)

    # Main check: small RGB images, lane-multiple spatial size.
    N, C, H, W = 2, 3, 16, 16
    pred = jax.random.uniform(k1, (N, C, H, W), dtype=jnp.float32)
    target = jax.random.uniform(k2, (N, C, H, W), dtype=jnp.float32)
    loss = luminance_l1_loss(pred, target, luminance_weight=0.5, loss_weight=1.0)
    loss = jax.block_until_ready(loss)
    ref = _reference(pred, target, luminance_weight=0.5, loss_weight=1.0)
    assert jnp.allclose(loss, ref, rtol=1e-5, atol=1e-6), (loss, ref)

    # Secondary check: C>3 and a non-128-multiple spatial size (exercises padding).
    N2, C2, H2, W2 = 2, 4, 13, 21
    pred2 = jax.random.uniform(k3, (N2, C2, H2, W2), dtype=jnp.float32)
    target2 = jax.random.uniform(k4, (N2, C2, H2, W2), dtype=jnp.float32)
    loss2 = luminance_l1_loss(pred2, target2, luminance_weight=0.3, loss_weight=2.0)
    loss2 = jax.block_until_ready(loss2)
    ref2 = _reference(pred2, target2, luminance_weight=0.3, loss_weight=2.0)
    assert jnp.allclose(loss2, ref2, rtol=1e-5, atol=1e-6), (loss2, ref2)

    print("KERNEL_OK")
</pallas_src>

<mosaic_0001>
module attributes {stable_mosaic.version = 11 : i64} {
  func.func @_luminance_l1_kernel(%arg0: i32, %arg1: i32, %arg2: memref<1x3x256xf32, #tpu.memory_space<vmem>>, %arg3: memref<1x3x256xf32, #tpu.memory_space<vmem>>, %arg4: memref<1x1x128xf32, #tpu.memory_space<vmem>>, %arg5: memref<1x1x128xf32, #tpu.memory_space<vmem>>, %arg6: memref<1x3x256xf32, #tpu.memory_space<vmem>>, %arg7: memref<1x1x256xf32, #tpu.memory_space<vmem>>) attributes {dimension_semantics = [#tpu.dimension_semantics<parallel>, #tpu.dimension_semantics<arbitrary>], iteration_bounds = array<i64: 2, 1>, scalar_prefetch = 0 : i64, scratch_operands = 2 : i64, tpu.core_type = #tpu.core_type<tc>, window_params = [{transform_indices = @transform_0, window_bounds = array<i64: 1, 3, 256>}, {transform_indices = @transform_1, window_bounds = array<i64: 1, 3, 256>}, {transform_indices = @transform_2, window_bounds = array<i64: 1, 1, 128>}, {transform_indices = @transform_3, window_bounds = array<i64: 1, 1, 128>}]} {
    %c0_i32 = arith.constant 0 : i32
    %0 = arith.cmpi eq, %arg1, %c0_i32 : i32
    %1 = arith.extui %0 : i1 to i32
    %c0_i32_0 = arith.constant 0 : i32
    %2 = arith.cmpi ne, %1, %c0_i32_0 : i32
    scf.if %2 {
      %cst_22 = arith.constant 0.000000e+00 : f32
      %28 = vector.broadcast %cst_22 : f32 to vector<1x3x256xf32>
      %c0_23 = arith.constant 0 : index
      %c0_24 = arith.constant 0 : index
      %c0_25 = arith.constant 0 : index
      %29 = vector.load %arg6[%c0_23, %c0_24, %c0_25] : memref<1x3x256xf32, #tpu.memory_space<vmem>>, vector<1x3x256xf32>
      tpu.vector_store %arg6[%c0_23, %c0_24, %c0_25], %28 {strides = array<i32>} : memref<1x3x256xf32, #tpu.memory_space<vmem>>, vector<1x3x256xf32>,
      %cst_26 = arith.constant 0.000000e+00 : f32
      %30 = vector.broadcast %cst_26 : f32 to vector<1x1x256xf32>
      %c0_27 = arith.constant 0 : index
      %c0_28 = arith.constant 0 : index
      %c0_29 = arith.constant 0 : index
      %31 = vector.load %arg7[%c0_27, %c0_28, %c0_29] : memref<1x1x256xf32, #tpu.memory_space<vmem>>, vector<1x1x256xf32>
      tpu.vector_store %arg7[%c0_27, %c0_28, %c0_29], %30 {strides = array<i32>} : memref<1x1x256xf32, #tpu.memory_space<vmem>>, vector<1x1x256xf32>,
    } else {
    }
    %c0 = arith.constant 0 : index
    %c0_1 = arith.constant 0 : index
    %c0_2 = arith.constant 0 : index
    %3 = vector.load %arg2[%c0, %c0_1, %c0_2] : memref<1x3x256xf32, #tpu.memory_space<vmem>>, vector<1x3x256xf32>
    %c0_3 = arith.constant 0 : index
    %c0_4 = arith.constant 0 : index
    %c0_5 = arith.constant 0 : index
    %4 = vector.load %arg3[%c0_3, %c0_4, %c0_5] : memref<1x3x256xf32, #tpu.memory_space<vmem>>, vector<1x3x256xf32>
    %5 = arith.subf %3, %4 : vector<1x3x256xf32>
    %c0_6 = arith.constant 0 : index
    %c0_7 = arith.constant 0 : index
    %c0_8 = arith.constant 0 : index
    %6 = vector.load %arg6[%c0_6, %c0_7, %c0_8] : memref<1x3x256xf32, #tpu.memory_space<vmem>>, vector<1x3x256xf32>
    %7 = math.absf %5 : vector<1x3x256xf32>
    %8 = arith.addf %6, %7 : vector<1x3x256xf32>
    %c0_9 = arith.constant 0 : index
    %c0_10 = arith.constant 0 : index
    %c0_11 = arith.constant 0 : index
    %9 = vector.load %arg6[%c0_9, %c0_10, %c0_11] : memref<1x3x256xf32, #tpu.memory_space<vmem>>, vector<1x3x256xf32>
    tpu.vector_store %arg6[%c0_9, %c0_10, %c0_11], %8 {strides = array<i32>} : memref<1x3x256xf32, #tpu.memory_space<vmem>>, vector<1x3x256xf32>,
    %10 = vector.extract_strided_slice %5 {offsets = [0, 0, 0], sizes = [1, 1, 256], strides = [1, 1, 1]} : vector<1x3x256xf32> to vector<1x1x256xf32>
    %cst = arith.constant 2.989000e-01 : f32
    %11 = vector.broadcast %cst : f32 to vector<1x1x256xf32>
    %12 = arith.mulf %11, %10 : vector<1x1x256xf32>
    %13 = vector.extract_strided_slice %5 {offsets = [0, 1, 0], sizes = [1, 1, 256], strides = [1, 1, 1]} : vector<1x3x256xf32> to vector<1x1x256xf32>
    %cst_12 = arith.constant 5.870000e-01 : f32
    %14 = vector.broadcast %cst_12 : f32 to vector<1x1x256xf32>
    %15 = arith.mulf %14, %13 : vector<1x1x256xf32>
    %16 = arith.addf %12, %15 : vector<1x1x256xf32>
    %17 = vector.extract_strided_slice %5 {offsets = [0, 2, 0], sizes = [1, 1, 256], strides = [1, 1, 1]} : vector<1x3x256xf32> to vector<1x1x256xf32>
    %cst_13 = arith.constant 1.140000e-01 : f32
    %18 = vector.broadcast %cst_13 : f32 to vector<1x1x256xf32>
    %19 = arith.mulf %18, %17 : vector<1x1x256xf32>
    %20 = arith.addf %16, %19 : vector<1x1x256xf32>
    %c0_14 = arith.constant 0 : index
    %c0_15 = arith.constant 0 : index
    %c0_16 = arith.constant 0 : index
    %21 = vector.load %arg7[%c0_14, %c0_15, %c0_16] : memref<1x1x256xf32, #tpu.memory_space<vmem>>, vector<1x1x256xf32>
    %22 = math.absf %20 : vector<1x1x256xf32>
    %23 = arith.addf %21, %22 : vector<1x1x256xf32>
    %c0_17 = arith.constant 0 : index
    %c0_18 = arith.constant 0 : index
    %c0_19 = arith.constant 0 : index
    %24 = vector.load %arg7[%c0_17, %c0_18, %c0_19] : memref<1x1x256xf32, #tpu.memory_space<vmem>>, vector<1x1x256xf32>
    tpu.vector_store %arg7[%c0_17, %c0_18, %c0_19], %23 {strides = array<i32>} : memref<1x1x256xf32, #tpu.memory_space<vmem>>, vector<1x1x256xf32>,
    %c0_i32_20 = arith.constant 0 : i32
    %25 = arith.cmpi eq, %arg1, %c0_i32_20 : i32
    %26 = arith.extui %25 : i1 to i32
    %c0_i32_21 = arith.constant 0 : i32
    %27 = arith.cmpi ne, %26, %c0_i32_21 : i32
    scf.if %27 {
      %c0_22 = arith.constant 0 : index
      %c0_23 = arith.constant 0 : index
      %c0_24 = arith.constant 0 : index
      %28 = vector.load %arg6[%c0_22, %c0_23, %c0_24] : memref<1x3x256xf32, #tpu.memory_space<vmem>>, vector<1x3x256xf32>
      %29 = vector.shape_cast %28 : vector<1x3x256xf32> to vector<1x1x3x256xf32>
      %cst_25 = arith.constant dense<0.000000e+00> : vector<1xf32>
      %30 = vector.multi_reduction <add>, %29, %cst_25 [1, 2, 3] : vector<1x1x3x256xf32> to vector<1xf32>
      %31 = vector.shape_cast %30 : vector<1xf32> to vector<1x1x1x1xf32>
      %32 = vector.extract %31[0, 0, 0, 0] : f32 from vector<1x1x1x1xf32>
      %c0_26 = arith.constant 0 : index
      %c0_27 = arith.constant 0 : index
      %c0_28 = arith.constant 0 : index
      %33 = vector.load %arg7[%c0_26, %c0_27, %c0_28] : memref<1x1x256xf32, #tpu.memory_space<vmem>>, vector<1x1x256xf32>
      %34 = vector.shape_cast %33 : vector<1x1x256xf32> to vector<1x1x1x256xf32>
      %cst_29 = arith.constant dense<0.000000e+00> : vector<1xf32>
      %35 = vector.multi_reduction <add>, %34, %cst_29 [1, 2, 3] : vector<1x1x1x256xf32> to vector<1xf32>
      %36 = vector.shape_cast %35 : vector<1xf32> to vector<1x1x1x1xf32>
      %37 = vector.extract %36[0, 0, 0, 0] : f32 from vector<1x1x1x1xf32>
      %38 = vector.broadcast %32 : f32 to vector<1x1x128xf32>
      %c0_30 = arith.constant 0 : index
      %c0_31 = arith.constant 0 : index
      %c0_32 = arith.constant 0 : index
      %39 = vector.load %arg4[%c0_30, %c0_31, %c0_32] : memref<1x1x128xf32, #tpu.memory_space<vmem>>, vector<1x1x128xf32>
      tpu.vector_store %arg4[%c0_30, %c0_31, %c0_32], %38 {strides = array<i32>} : memref<1x1x128xf32, #tpu.memory_space<vmem>>, vector<1x1x128xf32>,
      %40 = vector.broadcast %37 : f32 to vector<1x1x128xf32>
      %c0_33 = arith.constant 0 : index
      %c0_34 = arith.constant 0 : index
      %c0_35 = arith.constant 0 : index
      %41 = vector.load %arg5[%c0_33, %c0_34, %c0_35] : memref<1x1x128xf32, #tpu.memory_space<vmem>>, vector<1x1x128xf32>
      tpu.vector_store %arg5[%c0_33, %c0_34, %c0_35], %40 {strides = array<i32>} : memref<1x1x128xf32, #tpu.memory_space<vmem>>, vector<1x1x128xf32>,
    } else {
    }
    return
  }
  func.func @transform_0(%arg0: i32, %arg1: i32) -> (i32, i32, i32) {
    %c0_i32 = arith.constant 0 : i32
    %c0_i32_0 = arith.constant 0 : i32
    return %arg0, %c0_i32, %arg1 : i32, i32, i32
  }
  func.func @transform_1(%arg0: i32, %arg1: i32) -> (i32, i32, i32) {
    %c0_i32 = arith.constant 0 : i32
    %c0_i32_0 = arith.constant 0 : i32
    return %arg0, %c0_i32, %arg1 : i32, i32, i32
  }
  func.func @transform_2(%arg0: i32, %arg1: i32) -> (i32, i32, i32) {
    %c0_i32 = arith.constant 0 : i32
    %c0_i32_0 = arith.constant 0 : i32
    %c0_i32_1 = arith.constant 0 : i32
    return %arg0, %c0_i32, %c0_i32_0 : i32, i32, i32
  }
  func.func @transform_3(%arg0: i32, %arg1: i32) -> (i32, i32, i32) {
    %c0_i32 = arith.constant 0 : i32
    %c0_i32_0 = arith.constant 0 : i32
    %c0_i32_1 = arith.constant 0 : i32
    return %arg0, %c0_i32, %c0_i32_0 : i32, i32, i32
  }
}

</mosaic_0001>

<bundles_post_ra>
// kernel: tpu_custom_call.1
= control target key start
LH: loop header
LB: loop body
LE: loop exit
PB: predicated region body
PF: predicated region fallthrough
CT: control target
= control target key end

     0   :  { %9 = vsyncpa [#allocation5], 0  ;;  %s871_s0 = inlined_call_operand.vmem [shape: f32[2,3,256], index: 0, kind: input, shape index: {}]   ;;  %s872_s1 = inlined_call_operand.vmem [shape: f32[2,3,256], index: 1, kind: input, shape index: {}]   ;;  %s873_s2 = inlined_call_operand.hbm [shape: f32[2,1,128], index: 2, kind: output, shape index: {0}]   ;;  %s874_s3 = inlined_call_operand.hbm [shape: f32[2,1,128], index: 3, kind: output, shape index: {1}]  }
   0x1   :  { %11 = vsyncpa [#allocation5 + $0x1], 0 }
   0x2   :  { %12 = vsyncpa [#allocation7], 0 }
   0x3   :  { %14 = vsyncpa [#allocation7 + $0x1], 0  ;;  %s710_s12 = smov 0   ;;  %s712_s13 = smov 0  }
   0x4   :  { %s714_s14 = smov 0   ;;  %s716_s15 = smov 0  }
   0x5   :  { %s718_s16 = smov 0   ;;  %s720_s17 = smov 0  }
   0x6 LB: > { %s490_s18 = sadd.s32 4294967295, %s684_s17   ;;  %s491_s19 = sadd.s32 4294967294, %s684_s17   ;;  %s684_s17 = sphi %s720_s17, %s20_s17   ;;  %s680_s16 = sphi %s718_s16, %s883_s16   ;;  %s676_s15 = sphi %s716_s15, %s882_s15   ;;  %s672_s14 = sphi %s714_s14, %s881_s14   ;;  %s668_s13 = sphi %s712_s13, %s880_s13   ;;  %s664_s12 = sphi %s710_s12, %s879_s12  }
   0x7   : > { %s32_s20 = sadd.s32 1, %s680_s16  ;;  %s95_s21 = sadd.s32 1, %s672_s14 }
   0x8   : > { %p34_p0 = scmp.ge.s32.totalorder %s32_s20, 2  ;;  %p105_p1 = scmp.ne.s32.totalorder %s672_s14, %s668_s13 }
   0x9   : > { %p106_p2 = scmp.eq.s32.totalorder %s490_s18, 1  ;;  %p111_p3 = scmp.ne.s32.totalorder %s668_s13, %s664_s12 }
   0xa   : > { %s885_s20 = smov (%p34_p0, %s32_s20), 0  ;;  %p112_p5 = scmp.eq.s32.totalorder %s491_s19, 1 }
   0xb   : > { %p750_p4 = por %p106_p2, %p105_p1  ;;  %s92_s23 = ssub.s32 %s680_s16, %s885_s20 }
   0xc   : > { %p494_p6 = scmp.ge.s32.totalorder %s684_s17, 1  ;;  %p93_p7 = scmp.eq.s32.totalorder %s92_s23, 0 }
   0xd   : > { %p757_p8 = por %p112_p5, %p111_p3  ;;  %p182_p9 = scmp.lt.s32.totalorder %s684_s17, 3 }
   0xe   : > { %s763_s25 = scalar_select %p93_p7, %s672_s14, %s95_s21  }
   0xf   : > { %p183_p10 = pnand %p494_p6, %p182_p9 }
  0x10   : > { %p223_p11 = scmp.lt.s32.totalorder (!%p183_p10), %s676_s15, 1  ;;  %v247_v0 = vlaneseq (!%p183_p10)  ;;  %v686_v1 = vmov (!%p183_p10), 0.0   ;;  %v687_v6 = vmov (!%p183_p10), 1966171168   ;;  %vm303_vm1 = vcmask (!%p183_p10), 1042432   ;;  %s782_s7 = sand.u32 (!%p183_p10), 1, %s668_s13  }
  0x11   : > { %186 = sbr.rel (%p183_p10) target bundleno = 293 (0x125), region = 28  ;;  %246 = vst [vmem:[#allocation2] sm:$0x77] (!%p183_p10), %v686_v1  ;;  %v276_v7 = vunpack.c.l.s4 (!%p183_p10), %v687_v6  ;;  %vm328_vm2 = vcmask (!%p183_p10), 1040384   ;;  %s501_s8 = sshll.u32 (!%p183_p10), %s676_s15, 4 }
  0x12   : > { %vm767_vm0 = vcmp.lt.s32.totalorder (!%p183_p10), %v247_v0, 256  ;;  %v279_v16 = vshrl.u32 (!%p183_p10), %v247_v0, 7  ;;  %s215_s9 = scalar_lea.vmem (!%p183_p10), [#allocation4], %s782_s7  ;;  %s791_s19 = scalar_lea.hbm (!%p183_p10), %s873_s2, %s501_s8 }
  0x13   : > { %251 = vst.msk [vmem:[#allocation3] sm:$0x3] (!%p183_p10), %vm767_vm0, %v686_v1  ;;  %v277_v15 = vunpack.c.0.s8 (!%p183_p10), %v276_v7  ;;  %s362_s10 = sshll.u32 (!%p183_p10), %s215_s9, 4  ;;  %s346_s23 = scalar_lea.sflag (!%p183_p10), [#allocation5], %s782_s7  ;;  %s793_s10 = int_to_ptr.vmem [resolvable:$true] %s362_s10 }
  0x14   : > { %v320_v31 = vsub.s32 (!%p183_p10), 0, %v279_v16  ;;  %v324_v32 = vsub.s32 (!%p183_p10), 1, %v279_v16 }
  0x15   : > { %v280_v20 = vsub.s32 (!%p183_p10), %v277_v15, %v279_v16 }
  0x18   : > { %s224_s26 = scalar_select %p223_p11, %s676_s15, 1  ;;  %v255_v8 = vld [vmem:[#allocation2] sm:$0x77] }
  0x1a   : > { %s505_s27 = sshll.u32 %s224_s26, 3  ;;  %v272_v24 = vld [vmem:[#allocation3] sm:$0x3]  ;;  %s574_s26 = scalar_lea.vmem %s793_s10, 16 }
  0x1b   : > { %s230_s30 = scalar_lea.vmem %s871_s0, %s505_s27  ;;  %s240_s6 = scalar_lea.vmem %s872_s1, %s505_s27 }
  0x1c   : > { %v252_v3 = vld [vmem:[%s230_s30] sm:$0x77]  ;;  %p575_p12 = scmp.ne.s32.totalorder %s793_s10, %s574_s26  ;;  %s688_s27 = smov [#allocation4]  }
  0x1d   : > { %v253_v4 = vld [vmem:[%s240_s6] sm:$0x77]  ;;  %s578_s28 = sshll.u32 %s688_s27, 4  ;;  %s579_s28 = int_to_ptr.vmem [resolvable:$false] %s578_s28 }
  0x1e   : > { %v254_v5 = vsub.f32 %v252_v3, %v253_v4  ;;  %p576_p13 = pnand %p575_p12, %p750_p4  ;;  %s580_s29 = scalar_lea.vmem %s579_s28, 32 }
  0x1f   : > { %p581_p1 = scmp.lt.s32.totalorder %s793_s10, %s579_s28  ;;  %p582_p2 = scmp.lt.s32.totalorder %s580_s29, %s574_s26 }
  0x20   : > { %v256_v9 = vand.u32 2147483647, %v254_v5  ;;  %v259_v10 = vmul.f32 0.2989, %v254_v5  ;;  %v260_v11 = vmul.f32 0.587, %v254_v5  ;;  %p577_p0 = pneg %p576_p13 }
  0x21   : > { %v266_v12 = vmul.f32 0.114, %v254_v5  ;;  %p583_p3 = por %p582_p2, %p581_p1 }
  0x22   : > { %v257_v13 = vadd.f32 %v256_v9, %v255_v8  ;;  %v499_v14 = vrot.slane %v260_v11, 9 }
  0x23   : > { %v500_v17 = vrot.slane %v266_v12, 10  ;;  %p584_p5 = pnand %p583_p3, %p577_p0 }
  0x24   : > { %258 = vst [vmem:[#allocation2] sm:$0x77] %v257_v13  ;;  %v265_v18 = vadd.f32 %v499_v14, %v259_v10 }
  0x26   : > { %v271_v19 = vadd.f32 %v500_v17, %v265_v18 }
  0x28   : > { %v273_v21 = vand.u32 2147483647, %v271_v19 }
  0x2a   : > { %v281_v22 = vrot.slane %v273_v21, %v280_v20 }
  0x2b   : > { %v299_v23 = vld [vmem:[#allocation2] sm:$0x77] }
  0x2c   : > { %v301_v25 = vcombine.high %v299_v23, %v299_v23  ;;  %v304_v26 = vsel %vm303_vm1, %v299_v23, 0.0  ;;  %v288_v27 = vrot.slane %v281_v22, %v280_v20 }
  0x2e   : > { %v305_v28 = vsel %vm303_vm1, %v301_v25, 0.0  ;;  %v290_v29 = vadd.f32 %v288_v27, %v272_v24 }
  0x2f   : > { %v306_v30 = vadd.f32 %v305_v28, %v304_v26 }
  0x30   : > { %295 = vst.msk [vmem:[#allocation3] sm:$0x3] %vm767_vm0, %v290_v29 }
  0x31   : > { %307 = vadd.xlane.f32.xlu0 %v306_v30 }
  0x37   : > { %v316_v33 = vld [vmem:[#allocation3] sm:$0x3] }
  0x38   : > { %v321_v34 = vrot.slane %v316_v33, %v320_v31  ;;  %v325_v35 = vrot.slane %v316_v33, %v324_v32 }
  0x3a   : > { %v329_v36 = vsel %vm328_vm2, %v321_v34, 0.0  ;;  %v330_v37 = vsel %vm328_vm2, %v325_v35, 0.0 }
  0x3b   : > { %v331_v38 = vadd.f32 %v330_v37, %v329_v36 }
  0x3d   : > { %332 = vadd.xlane.f32.xlu0 %v331_v38 }
  0xbe   : > { %v308_v39 = vpop.xlane.xlu0 %307 }
  0xbf   : > { %v309_v40 = vrot.slane %v308_v39, 4 }
  0xc1   : > { %v310_v41 = vadd.f32 %v309_v40, %v308_v39 }
  0xc3   : > { %v311_v42 = vrot.slane %v310_v41, 2 }
  0xc5   : > { %v312_v43 = vadd.f32 %v311_v42, %v310_v41 }
  0xc7   : > { %v313_v44 = vrot.slane %v312_v43, 1 }
  0xc9   : > { %v314_v45 = vadd.f32 %v313_v44, %v312_v43 }
  0xca   : > { %v333_v46 = vpop.xlane.xlu0 %332 }
  0xcb   : > { %v334_v47 = vrot.slane %v333_v46, 4  ;;  %507 = vpush %v314_v45 }
  0xcd   : > { %v335_v48 = vadd.f32 %v334_v47, %v333_v46 }
  0xcf   : > { %v336_v49 = vrot.slane %v335_v48, 2 }
  0xd1   : > { %v337_v50 = vadd.f32 %v336_v49, %v335_v48 }
  0xd3   : > { %v338_v51 = vrot.slane %v337_v50, 1 }
  0xd5   : > { %v339_v52 = vadd.f32 %v338_v51, %v337_v50 }
  0xd7   : > { %509 = vpush %v339_v52 }
  0xfc   : > { %s508_s21 = spop %507 }
  0xfd   : > { %v341_v53 = vstv %s508_s21 }
  0xfe   : > { %342 = vst [vmem:[%s215_s9] sm:$0x1] %v341_v53 }
  0xff   : > { %587 = shalt.err (!%p584_p5)
}
 0x100   : > { %s588_s30 = scalar_lea.hbm %s791_s19, 16  ;;  %s592_s6 = scalar_lea.hbm %s873_s2, 32 }
 0x101   : > { %p589_p6 = scmp.ne.s32.totalorder %s791_s19, %s588_s30  ;;  %p593_p10 = scmp.lt.u32.totalorder %s791_s19, %s873_s2 }
 0x102   : > { %p594_p11 = scmp.lt.u32.totalorder %s592_s6, %s588_s30  ;;  %p596_p13 = scmp.lt.u32.totalorder %s588_s30, %s791_s19 }
 0x103   : > { %p590_p7 = pnand %p589_p6, %p750_p4 }
 0x104   : > { %p595_p12 = por %p594_p11, %p593_p10 }
 0x105   : > { %p591_p9 = pneg %p590_p7 }
 0x106   : > { %p597_p0 = por %p596_p13, %p595_p12 }
 0x108   : > { %p598_p1 = pnand %p597_p0, %p591_p9 }
 0x10a   : > { %601 = shalt.err (!%p598_p1)
}
 0x10b   : > { %511 = dma.vmem_to_hbm [thread:$0]  (%p750_p4), %s793_s10, 16, %s791_s19, %s346_s23  }
 0x10c   : > { %s221_s18 = scalar_lea.vmem [#allocation6], %s782_s7  ;;  %s510_s26 = spop %509 }
 0x10d   : > { %s375_s21 = sshll.u32 %s221_s18, 4  ;;  %s825_s29 = scalar_lea.hbm %s874_s3, %s501_s8  ;;  %v343_v54 = vstv %s510_s26  ;;  %s818_s21 = int_to_ptr.vmem [resolvable:$true] %s375_s21 }
 0x10e   : > { %344 = vst [vmem:[%s221_s18] sm:$0x1] %v343_v54  ;;  %s350_s30 = scalar_lea.sflag [#allocation7], %s782_s7  ;;  %s602_s4 = scalar_lea.vmem %s818_s21, 16 }
 0x10f   : > { %p603_p2 = scmp.ne.s32.totalorder %s818_s21, %s602_s4  ;;  %s689_s10 = smov [#allocation6]  }
 0x110   : > { %s606_s19 = sshll.u32 %s689_s10, 4  ;;  %s607_s19 = int_to_ptr.vmem [resolvable:$false] %s606_s19 }
 0x111   : > { %p604_p3 = pnand %p603_p2, %p750_p4  ;;  %s608_s23 = scalar_lea.vmem %s607_s19, 32 }
 0x112   : > { %p609_p6 = scmp.lt.s32.totalorder %s818_s21, %s607_s19  ;;  %p610_p7 = scmp.lt.s32.totalorder %s608_s23, %s602_s4 }
 0x113   : > { %p605_p5 = pneg %p604_p3 }
 0x114   : > { %p611_p9 = por %p610_p7, %p609_p6 }
 0x116   : > { %p612_p10 = pnand %p611_p9, %p605_p5 }
 0x118   : > { %615 = shalt.err (!%p612_p10)
}
 0x119   : > { %s616_s15 = scalar_lea.hbm %s825_s29, 16  ;;  %s620_s5 = scalar_lea.hbm %s874_s3, 32 }
 0x11a   : > { %p617_p11 = scmp.ne.s32.totalorder %s825_s29, %s616_s15  ;;  %p621_p0 = scmp.lt.u32.totalorder %s825_s29, %s874_s3 }
 0x11b   : > { %p622_p1 = scmp.lt.u32.totalorder %s620_s5, %s616_s15  ;;  %p624_p3 = scmp.lt.u32.totalorder %s616_s15, %s825_s29 }
 0x11c   : > { %p618_p12 = pnand %p617_p11, %p750_p4 }
 0x11d   : > { %p623_p2 = por %p622_p1, %p621_p0 }
 0x11e   : > { %p619_p13 = pneg %p618_p12 }
 0x11f   : > { %p625_p5 = por %p624_p3, %p623_p2 }
 0x121   : > { %p626_p6 = pnand %p625_p5, %p619_p13 }
 0x123   : > { %629 = shalt.err (!%p626_p6)
}
 0x124   : > { %512 = dma.vmem_to_hbm [thread:$0]  (%p750_p4), %s818_s21, 16, %s825_s29, %s350_s30  }
 0x125 PF: > { %p522_p7 = scmp.ge.s32.totalorder %s684_s17, 2  ;;  %s387_s11 = sand.u32 1, %s664_s12  }
 0x126   : > { %s388_s18 = scalar_lea.sflag [#allocation5], %s387_s11 }
 0x127   : > { %p516_p9 = pnand %p522_p7, %p757_p8 }
 0x129   : > { %655 = dma.done.wait (!%p516_p9), %s388_s18, 16  }
 0x12a   : > { %657 = vsyncadd (!%p516_p9), %s388_s18, 4294967280  ;;  %s396_s26 = scalar_lea.sflag [#allocation7], %s387_s11 }
 0x12b   : > { %659 = dma.done.wait (!%p516_p9), %s396_s26, 16  }
 0x12c   : > { %661 = vsyncadd (!%p516_p9), %s396_s26, 4294967280  ;;  %s20_s17 = sadd.s32 1, %s684_s17   ;;  %s879_s12 = smov %s668_s13 }
 0x12d   : > { %p17_p10 = scmp.ge.s32.totalorder %s20_s17, 4   ;;  %s880_s13 = smov %s672_s14 }
 0x12e   : > { %s881_s14 = smov %s763_s25  ;;  %s882_s15 = smov %s680_s16 }
 0x12f   : > { %s883_s16 = smov %s885_s20  ;;  %19 = sbr.rel (!%p17_p10) target bundleno = 6 (0x6), region = 91 }
 0x136   :  { %400 = vsyncpa [#allocation5], 1 }
 0x137   :  { %402 = vsyncpa [#allocation5 + $0x1], 1 }
 0x138   :  { %403 = vsyncpa [#allocation7], 1 }
 0x139   :  { %405 = vsyncpa [#allocation7 + $0x1], 1 }

</bundles_post_ra>
